<compile_context>
chip_gen: v7x
topology: tpu7x:2x2x1
jax: 0.10.0
libtpu: 0.0.40
codegen_flags: <defaults>
</compile_context>

<pallas_src>
import functools

import jax
import jax.numpy as jnp
from jax.experimental import pallas as pl
from jax.experimental.pallas import tpu as pltpu


def _nll_smooth_kernel(x_ref, t_ref, out_ref, *, confidence, smoothing,
                       n_rows, tile_m):
    i = pl.program_id(0)

    x = x_ref[...].astype(jnp.float32)      # (TM, C)
    t = t_ref[...].astype(jnp.float32)      # (TM, C)
    c = x.shape[-1]

    # Numerically-stable logsumexp pieces along the class (last) axis.
    m = jnp.max(x, axis=-1, keepdims=True)                               # (TM,1)
    lse = jnp.log(jnp.sum(jnp.exp(x - m), axis=-1, keepdims=True))       # (TM,1)

    # Fused loss: -logprob = m + lse - x, so
    #   loss = sum_c((m+lse-x) * (conf*t + s/C))
    #        = (m+lse)*(conf*sum_t + s) - conf*sum(x*t) - (s/C)*sum(x)
    sum_t = jnp.sum(t, axis=-1, keepdims=True)                            # (TM,1)
    sum_xt = jnp.sum(x * t, axis=-1, keepdims=True)                       # (TM,1)
    sum_x = jnp.sum(x, axis=-1, keepdims=True)                            # (TM,1)

    loss = ((m + lse) * (confidence * sum_t + smoothing)
            - confidence * sum_xt
            - (smoothing / c) * sum_x)                                    # (TM,1)

    # Ragged-tail mask: padded rows may hold garbage, but all reductions above
    # are per-row, so the garbage stays in its own row's loss. Select it to 0
    # here (cheap: tile_m elements, not tile_m*C) BEFORE the block sum.
    row_ids = i * tile_m + jax.lax.broadcasted_iota(jnp.int32, (tile_m, 1), 0)
    loss = jnp.where(row_ids < n_rows, loss, 0.0)

    # Per-block partial sum, splatted into a lane-dense (1, 8, 128) tile so
    # the writeback is an unmasked store of a single 4 KiB tile.
    block_sum = jnp.sum(loss)
    out_ref[...] = jnp.full(out_ref.shape, block_sum, dtype=jnp.float32)


def _vmem_capacity_bytes():
    """Physical VMEM of the attached TPU; conservative (v7x) fallback."""
    try:
        info = pltpu.get_tpu_info()
        cap = getattr(info, "vmem_capacity_bytes", None)
        if cap:
            return int(cap)
    except Exception:
        pass
    return 64 << 20


def _pick_tile_m(n, c, x_itemsize, t_itemsize, vmem_budget_bytes):
    """Largest sublane-aligned row tile whose pipeline buffers fit the budget,
    capped so the grid has >= 2 blocks when the batch allows (v7x megacore)."""
    # 2 pipeline buffers per input in HBM dtype + ~5 f32 (tile_m, C) temps
    # (x/t upcasts, shifted/exp, x*t).
    per_row = 2 * c * (x_itemsize + t_itemsize) + 5 * c * 4
    tile_m = vmem_budget_bytes // per_row
    tile_m = max(8, min(1024, (tile_m // 8) * 8))     # sublane-aligned, capped

    n_pad8 = ((n + 7) // 8) * 8
    tile_m = min(tile_m, n_pad8)
    if n_pad8 >= 16 and tile_m >= n_pad8:
        # Split into >= 2 blocks so both v7x TensorCores get work.
        tile_m = ((n_pad8 // 2 + 7) // 8) * 8
    return max(8, tile_m)


def nll_multilabel_smooth(x, target, smoothing=0.1, tile_m=None):
    """Pallas implementation of NLLMultiLabelSmooth.forward (training mode).

    Inputs may be f32 or bf16; all in-kernel math runs in f32.
    """
    assert x.shape == target.shape and x.ndim == 2
    n, c = x.shape
    confidence = 1.0 - smoothing

    # Generation-aware VMEM budget: same source for tile sizing and the
    # compiler limit (sizing gets a bit less than the limit for headroom).
    vmem_cap = _vmem_capacity_bytes()
    tile_budget = int(vmem_cap * 0.60)          # ~77 MiB v5e/v6e, ~38 MiB v7x
    vmem_limit = int(vmem_cap * 0.70)           # ~90 MiB v5e/v6e, ~45 MiB v7x

    if tile_m is None:
        tile_m = _pick_tile_m(n, c, x.dtype.itemsize, target.dtype.itemsize,
                              tile_budget)

    n_blocks = pl.cdiv(n, tile_m)

    kernel = functools.partial(
        _nll_smooth_kernel,
        confidence=float(confidence),     # static Python floats -> folded
        smoothing=float(smoothing),
        n_rows=n,
        tile_m=tile_m,
    )

    # TODO(synk): for vocab-scale C (>= ~16k classes) add a trailing
    # "arbitrary" grid axis over C with an online max/sum-exp so tile_m stays
    # large under v7x's 64 MiB VMEM; the full-C block here is fine for
    # classification-scale C.
    partials = pl.pallas_call(
        kernel,
        out_shape=jax.ShapeDtypeStruct((n_blocks, 8, 128), jnp.float32),
        grid_spec=pltpu.PrefetchScalarGridSpec(
            num_scalar_prefetch=0,
            grid=(n_blocks,),
            in_specs=[
                pl.BlockSpec((tile_m, c), lambda i: (i, 0)),
                pl.BlockSpec((tile_m, c), lambda i: (i, 0)),
            ],
            out_specs=pl.BlockSpec((1, 8, 128), lambda i: (i, 0, 0)),
        ),
        compiler_params=pltpu.CompilerParams(
            dimension_semantics=("parallel",),   # no shared accumulator
            vmem_limit_bytes=vmem_limit,
        ),
    )(x, target)

    # Tiny final reduction (n_blocks scalars) in plain JAX.
    return jnp.sum(partials[:, 0, 0]) / jnp.float32(n)


def _reference(x, target, smoothing=0.1):
    x = x.astype(jnp.float32)
    target = target.astype(jnp.float32)
    logprobs = jax.nn.log_softmax(x, axis=-1)
    nll_loss = jnp.sum(-logprobs * target, axis=-1)
    smooth_loss = -jnp.mean(logprobs, axis=-1)
    loss = (1.0 - smoothing) * nll_loss + smoothing * smooth_loss
    return jnp.mean(loss)


# TODO(synk): eval-mode branch (F.cross_entropy with integer class targets)
# and the backward pass (custom_vjp) are not implemented; only the
# training-mode forward is translated.

if __name__ == "__main__":
    key = jax.random.PRNGKey(0)
    k1, k2 = jax.random.split(key)

    N, C = 16, 32          # small batch, num_classes
    smoothing = 0.1

    x = jax.random.normal(k1, (N, C), dtype=jnp.float32)
    # soft multi-label targets (as produced by mixup): rows sum to 1
    labels = jax.random.randint(k2, (N,), 0, C)
    onehot_a = jax.nn.one_hot(labels, C, dtype=jnp.float32)
    onehot_b = jax.nn.one_hot(jnp.roll(labels, 1), C, dtype=jnp.float32)
    target = 0.7 * onehot_a + 0.3 * onehot_b

    loss = nll_multilabel_smooth(x, target, smoothing=smoothing)
    jax.block_until_ready(loss)

    ref = _reference(x, target, smoothing=smoothing)
    assert jnp.allclose(loss, ref, atol=1e-5, rtol=1e-5), (loss, ref)

    print("KERNEL_OK")
</pallas_src>

<mosaic_0001>
module attributes {stable_mosaic.version = 11 : i64} {
  func.func @_nll_smooth_kernel(%arg0: i32, %arg1: memref<8x32xf32, #tpu.memory_space<vmem>>, %arg2: memref<8x32xf32, #tpu.memory_space<vmem>>, %arg3: memref<1x8x128xf32, #tpu.memory_space<vmem>>) attributes {dimension_semantics = [#tpu.dimension_semantics<parallel>], iteration_bounds = array<i64: 2>, scalar_prefetch = 0 : i64, scratch_operands = 0 : i64, tpu.core_type = #tpu.core_type<tc>, window_params = [{transform_indices = @transform_0, window_bounds = array<i64: 8, 32>}, {transform_indices = @transform_1, window_bounds = array<i64: 8, 32>}, {transform_indices = @transform_2, window_bounds = array<i64: 1, 8, 128>}]} {
    %c0 = arith.constant 0 : index
    %c0_0 = arith.constant 0 : index
    %0 = vector.load %arg1[%c0, %c0_0] : memref<8x32xf32, #tpu.memory_space<vmem>>, vector<8x32xf32>
    %c0_1 = arith.constant 0 : index
    %c0_2 = arith.constant 0 : index
    %1 = vector.load %arg2[%c0_1, %c0_2] : memref<8x32xf32, #tpu.memory_space<vmem>>, vector<8x32xf32>
    %cst = arith.constant dense<0xFF800000> : vector<8xf32>
    %2 = vector.multi_reduction <maximumf>, %0, %cst [1] : vector<8x32xf32> to vector<8xf32>
    %3 = vector.shape_cast %2 : vector<8xf32> to vector<8x1xf32>
    %4 = vector.broadcast %3 : vector<8x1xf32> to vector<8x32xf32>
    %5 = arith.subf %0, %4 : vector<8x32xf32>
    %6 = math.exp %5 : vector<8x32xf32>
    %cst_3 = arith.constant dense<0.000000e+00> : vector<8xf32>
    %7 = vector.multi_reduction <add>, %6, %cst_3 [1] : vector<8x32xf32> to vector<8xf32>
    %8 = vector.shape_cast %7 : vector<8xf32> to vector<8x1xf32>
    %9 = math.log %8 : vector<8x1xf32>
    %cst_4 = arith.constant dense<0.000000e+00> : vector<8xf32>
    %10 = vector.multi_reduction <add>, %1, %cst_4 [1] : vector<8x32xf32> to vector<8xf32>
    %11 = vector.shape_cast %10 : vector<8xf32> to vector<8x1xf32>
    %12 = arith.mulf %0, %1 : vector<8x32xf32>
    %cst_5 = arith.constant dense<0.000000e+00> : vector<8xf32>
    %13 = vector.multi_reduction <add>, %12, %cst_5 [1] : vector<8x32xf32> to vector<8xf32>
    %14 = vector.shape_cast %13 : vector<8xf32> to vector<8x1xf32>
    %cst_6 = arith.constant dense<0.000000e+00> : vector<8xf32>
    %15 = vector.multi_reduction <add>, %0, %cst_6 [1] : vector<8x32xf32> to vector<8xf32>
    %16 = vector.shape_cast %15 : vector<8xf32> to vector<8x1xf32>
    %17 = arith.addf %3, %9 : vector<8x1xf32>
    %cst_7 = arith.constant 0.899999976 : f32
    %18 = vector.broadcast %cst_7 : f32 to vector<8x1xf32>
    %19 = arith.mulf %18, %11 : vector<8x1xf32>
    %cst_8 = arith.constant 1.000000e-01 : f32
    %20 = vector.broadcast %cst_8 : f32 to vector<8x1xf32>
    %21 = arith.addf %19, %20 : vector<8x1xf32>
    %22 = arith.mulf %17, %21 : vector<8x1xf32>
    %cst_9 = arith.constant 0.899999976 : f32
    %23 = vector.broadcast %cst_9 : f32 to vector<8x1xf32>
    %24 = arith.mulf %23, %14 : vector<8x1xf32>
    %25 = arith.subf %22, %24 : vector<8x1xf32>
    %cst_10 = arith.constant 3.125000e-03 : f32
    %26 = vector.broadcast %cst_10 : f32 to vector<8x1xf32>
    %27 = arith.mulf %26, %16 : vector<8x1xf32>
    %28 = arith.subf %25, %27 : vector<8x1xf32>
    %c8_i32 = arith.constant 8 : i32
    %29 = arith.muli %arg0, %c8_i32 : i32
    %30 = tpu.iota {dimensions = array<i32: 0>} : vector<8x1xi32>
    %31 = vector.broadcast %29 : i32 to vector<8x1xi32>
    %32 = arith.addi %31, %30 : vector<8x1xi32>
    %c16_i32 = arith.constant 16 : i32
    %33 = vector.broadcast %c16_i32 : i32 to vector<8x1xi32>
    %34 = arith.cmpi slt, %32, %33 : vector<8x1xi32>
    %cst_11 = arith.constant 0.000000e+00 : f32
    %35 = vector.broadcast %cst_11 : f32 to vector<8x1xf32>
    %36 = arith.select %34, %28, %35 : vector<8x1xi1>, vector<8x1xf32>
    %37 = vector.shape_cast %36 : vector<8x1xf32> to vector<1x8x1xf32>
    %cst_12 = arith.constant dense<0.000000e+00> : vector<1xf32>
    %38 = vector.multi_reduction <add>, %37, %cst_12 [1, 2] : vector<1x8x1xf32> to vector<1xf32>
    %39 = vector.shape_cast %38 : vector<1xf32> to vector<1x1x1xf32>
    %40 = vector.extract %39[0, 0, 0] : f32 from vector<1x1x1xf32>
    %41 = vector.broadcast %40 : f32 to vector<1x8x128xf32>
    %c0_13 = arith.constant 0 : index
    %c0_14 = arith.constant 0 : index
    %c0_15 = arith.constant 0 : index
    %42 = vector.load %arg3[%c0_13, %c0_14, %c0_15] : memref<1x8x128xf32, #tpu.memory_space<vmem>>, vector<1x8x128xf32>
    tpu.vector_store %arg3[%c0_13, %c0_14, %c0_15], %41 {strides = array<i32>} : memref<1x8x128xf32, #tpu.memory_space<vmem>>, vector<1x8x128xf32>,
    return
  }
  func.func @transform_0(%arg0: i32) -> (i32, i32) {
    %c0_i32 = arith.constant 0 : i32
    %c0_i32_0 = arith.constant 0 : i32
    return %arg0, %c0_i32 : i32, i32
  }
  func.func @transform_1(%arg0: i32) -> (i32, i32) {
    %c0_i32 = arith.constant 0 : i32
    %c0_i32_0 = arith.constant 0 : i32
    return %arg0, %c0_i32 : i32, i32
  }
  func.func @transform_2(%arg0: i32) -> (i32, i32, i32) {
    %c0_i32 = arith.constant 0 : i32
    %c0_i32_0 = arith.constant 0 : i32
    %c0_i32_1 = arith.constant 0 : i32
    return %arg0, %c0_i32, %c0_i32_0 : i32, i32, i32
  }
}

</mosaic_0001>

<bundles_post_ra>
// kernel: tpu_custom_call.1
= control target key start
LH: loop header
LB: loop body
LE: loop exit
PB: predicated region body
PF: predicated region fallthrough
CT: control target
= control target key end

     0   :  { %7 = vsyncpa [#allocation3], 0  ;;  %s798_s0 = inlined_call_operand.hbm [shape: f32[16,32], index: 0, kind: input, shape index: {}]   ;;  %s799_s1 = inlined_call_operand.hbm [shape: f32[16,32], index: 1, kind: input, shape index: {}]   ;;  %s800_s2 = inlined_call_operand.hbm [shape: f32[2,8,128], index: 2, kind: output, shape index: {}]  }
   0x1   :  { %9 = vsyncpa [#allocation3 + $0x1], 0 }
   0x2   :  { %10 = vsyncpa [#allocation6], 0 }
   0x3   :  { %12 = vsyncpa [#allocation6 + $0x1], 0 }
   0x4   :  { %13 = vsyncpa [#allocation4], 0 }
   0x5   :  { %15 = vsyncpa [#allocation4 + $0x1], 0  ;;  %s578_s9 = smov 0   ;;  %s580_s10 = smov 0  }
   0x6   :  { %s582_s11 = smov 0   ;;  %s584_s12 = smov 0  }
   0x7 LB: > { %s599_s13 = sadd.s32 4294967295, %s558_s12   ;;  %s355_s14 = sadd.s32 4294967294, %s558_s12   ;;  %s558_s12 = sphi %s584_s12, %s819_s12   ;;  %s554_s11 = sphi %s582_s11, %s818_s11   ;;  %s550_s10 = sphi %s580_s10, %s817_s10   ;;  %s546_s9 = sphi %s578_s9, %s816_s9  }
   0x8   : > { %s603_s15 = sadd.s32 1, %s558_s12   ;;  %s28_s16 = sadd.s32 1, %s554_s11 }
   0x9   : > { %s25_s17 = ssub.s32 %s558_s12, %s603_s15  ;;  %p35_p0 = scmp.ne.s32.totalorder %s554_s11, %s550_s10 }
   0xa   : > { %p26_p1 = scmp.eq.s32.totalorder %s25_s17, 0  ;;  %p36_p2 = scmp.eq.s32.totalorder %s558_s12, 0 }
   0xb   : > { %p41_p3 = scmp.ne.s32.totalorder %s550_s10, %s546_s9  ;;  %p42_p4 = scmp.eq.s32.totalorder %s599_s13, 0 }
   0xc   : > { %s615_s18 = scalar_select %p26_p1, %s554_s11, %s28_s16  }
   0xd   : > { %p617_p5 = por %p36_p2, %p35_p0  ;;  %p621_p6 = por %p42_p4, %p41_p3 }
   0xe   : > { %p91_p7 = scmp.eq.s32.totalorder %s599_s13, 1  ;;  %p97_p8 = scmp.eq.s32.totalorder %s355_s14, 1 }
   0xf   : > { %s804_s20 = scalar_select %p621_p6, 1, 0 }
  0x10   : > { %p390_p10 = scmp.lt.s32.totalorder %s558_s12, 2  ;;  %p628_p11 = por %p91_p7, %p35_p0 }
  0x11   : > { %p632_p12 = por %p97_p8, %p41_p3  ;;  %s637_s23 = sand.u32 1, %s554_s11  }
  0x12   : > { %s805_s21 = scalar_select %p628_p11, 1, 0 }
  0x13   : > { %s806_s22 = scalar_select %p632_p12, 1, 0 }
  0x14   : > { %s359_s24 = sshll.u32 %s558_s12, 7  ;;  %s358_s25 = sshll.u32 %s637_s23, 3 }
  0x15   : > { %s646_s28 = scalar_lea.hbm %s798_s0, %s359_s24  ;;  %s121_s29 = scalar_lea.vmem [#allocation2], %s358_s25 }
  0x16   : > { %s128_s30 = sshll.u32 %s121_s29, 4  ;;  %p652_p13 = pnand %p390_p10, %p617_p5  ;;  %s656_s30 = int_to_ptr.vmem [resolvable:$true] %s128_s30 }
  0x17   : > { %s118_s4 = scalar_lea.sflag [#allocation3], %s637_s23  ;;  %s428_s5 = scalar_lea.hbm %s646_s28, 128 }
  0x18   : > { %p429_p2 = scmp.ne.s32.totalorder %s646_s28, %s428_s5  ;;  %p430_p3 = pneg %p652_p13 }
  0x19   : > { %s433_s8 = scalar_lea.hbm %s798_s0, 256  ;;  %p434_p5 = scmp.lt.u32.totalorder %s646_s28, %s798_s0 }
  0x1a   : > { %p431_p4 = pnand %p430_p3, %p429_p2  ;;  %p435_p8 = scmp.lt.u32.totalorder %s433_s8, %s428_s5 }
  0x1b   : > { %p437_p9 = scmp.lt.u32.totalorder %s428_s5, %s646_s28 }
  0x1c   : > { %p432_p7 = pneg %p431_p4  ;;  %p436_p10 = por %p435_p8, %p434_p5 }
  0x1e   : > { %p438_p0 = por %p437_p9, %p436_p10 }
  0x20   : > { %p439_p1 = pnand %p438_p0, %p432_p7 }
  0x22   : > { %442 = shalt.err (!%p439_p1)
}
  0x23   : > { %s443_s17 = scalar_lea.vmem %s656_s30, 128  ;;  %s560_s19 = smov [#allocation2]  }
  0x24   : > { %p444_p2 = scmp.ne.s32.totalorder %s656_s30, %s443_s17  ;;  %s448_s26 = sshll.u32 %s560_s19, 4  ;;  %s449_s26 = int_to_ptr.vmem [resolvable:$false] %s448_s26 }
  0x25   : > { %s450_s27 = scalar_lea.vmem %s449_s26, 256  ;;  %p451_p11 = scmp.lt.s32.totalorder %s656_s30, %s449_s26 }
  0x26   : > { %p446_p4 = pnand %p444_p2, %p430_p3  ;;  %p452_p5 = scmp.lt.s32.totalorder %s450_s27, %s443_s17 }
  0x28   : > { %p447_p12 = pneg %p446_p4  ;;  %p453_p8 = por %p452_p5, %p451_p11 }
  0x2a   : > { %p454_p9 = pnand %p453_p8, %p447_p12 }
  0x2c   : > { %457 = shalt.err (!%p454_p9)
}
  0x2d   : > { %382 = dma.hbm_to_vmem [thread:$0]  (!%p652_p13), %s646_s28, 128, %s656_s30, %s118_s4  }
  0x2e   : > { %p808_p0 = scmp.lt.s32.totalorder %s558_s12, 3  ;;  %p809_p1 = scmp.ge.s32.totalorder %s558_s12, 1 }
  0x2f   : > { %s699_s7 = scalar_lea.hbm %s799_s1, %s359_s24  ;;  %s139_s8 = scalar_lea.vmem [#allocation5], %s358_s25 }
  0x30   : > { %p690_p7 = pnand %p809_p1, %p808_p0  ;;  %s146_s14 = sshll.u32 %s139_s8, 4  ;;  %s147_s14 = int_to_ptr.vmem [resolvable:$true] %s146_s14 }
  0x31   : > { %s136_s28 = scalar_lea.sflag [#allocation6], %s637_s23  ;;  %s458_s30 = scalar_lea.hbm %s699_s7, 128 }
  0x32   : > { %s810_s29 = scalar_select %p690_p7, 1, 0 }
  0x33   : > { %p459_p11 = scmp.ne.s32.totalorder %s699_s7, %s458_s30  ;;  %s463_s24 = scalar_lea.hbm %s799_s1, 256 }
  0x34   : > { %p464_p2 = scmp.lt.u32.totalorder %s699_s7, %s799_s1  ;;  %p465_p4 = scmp.lt.u32.totalorder %s463_s24, %s458_s30 }
  0x35   : > { %p461_p12 = pnand %p459_p11, %p430_p3  ;;  %p467_p8 = scmp.lt.u32.totalorder %s458_s30, %s699_s7 }
  0x36   : > { %p466_p5 = por %p465_p4, %p464_p2 }
  0x37   : > { %p462_p10 = pneg %p461_p12 }
  0x38   : > { %p468_p9 = por %p467_p8, %p466_p5 }
  0x3a   : > { %p469_p0 = pnand %p468_p9, %p462_p10 }
  0x3c   : > { %472 = shalt.err (!%p469_p0)
}
  0x3d   : > { %s473_s23 = scalar_lea.vmem %s147_s14, 128  ;;  %s561_s25 = smov [#allocation5]  }
  0x3e   : > { %p474_p1 = scmp.ne.s32.totalorder %s147_s14, %s473_s23  ;;  %s478_s26 = sshll.u32 %s561_s25, 4  ;;  %s479_s26 = int_to_ptr.vmem [resolvable:$false] %s478_s26 }
  0x3f   : > { %s480_s27 = scalar_lea.vmem %s479_s26, 256  ;;  %p481_p6 = scmp.lt.s32.totalorder %s147_s14, %s479_s26 }
  0x40   : > { %p476_p11 = pnand %p474_p1, %p430_p3  ;;  %p482_p7 = scmp.lt.s32.totalorder %s480_s27, %s473_s23 }
  0x42   : > { %p477_p12 = pneg %p476_p11  ;;  %p483_p2 = por %p482_p7, %p481_p6 }
  0x44   : > { %p484_p4 = pnand %p483_p2, %p477_p12 }
  0x46   : > { %487 = shalt.err (!%p484_p4)
}
  0x47   : > { %385 = dma.hbm_to_vmem [thread:$0]  (!%p652_p13), %s699_s7, 128, %s147_s14, %s136_s28  }
  0x48   : > { %p811_p10 = scmp.ne.s32.totalorder %s810_s29, 0 }
  0x49   : > { %s726_s5 = sand.u32 (!%p811_p10), 1, %s550_s10   ;;  %p812_p6 = scmp.ne.s32.totalorder (!%p811_p10), %s804_s20, 0 }
  0x4a   : > { %155 = sbr.rel (%p811_p10) target bundleno = 628 (0x274), region = 28  ;;  %s729_s6 = sshll.u32 (!%p811_p10), %s726_s5, 3 }
  0x4b   : > { %s158_s8 = scalar_lea.sflag (!%p811_p10), [#allocation3], %s726_s5  ;;  %s161_s30 = scalar_lea.vmem (!%p811_p10), [#allocation2], %s729_s6 }
  0x51   : > { %533 = dma.done.wait (%p812_p6), %s158_s8, 128  }
  0x52   : > { %535 = vsyncadd (%p812_p6), %s158_s8, 4294967168  ;;  %s167_s3 = scalar_lea.sflag [#allocation6], %s726_s5  ;;  %s170_s29 = scalar_lea.vmem [#allocation5], %s729_s6 }
  0x53   : > { %537 = dma.done.wait (%p812_p6), %s167_s3, 128  }
  0x54   : > { %539 = vsyncadd (%p812_p6), %s167_s3, 4294967168  ;;  %vm198_vm0 = vcmask 261120   ;;  %v196_v0 = vld [vmem:[%s161_s30] sm:$0xff]  ;;  %v197_v2 = vld [vmem:[%s170_s29] sm:$0xff]  ;;  %v229_v14 = vlaneseq  ;;  %s366_s20 = sshll.u32 %s599_s13, 3  ;;  %vm235_vm2 = vcmask 7168  }
  0x55   : > { %v199_v1 = vsel %vm198_vm0, %v196_v0, -inf  ;;  %v210_v3 = vsel %vm198_vm0, %v197_v2, 0.0  ;;  %v213_v4 = vmul.f32 %v197_v2, %v196_v0  ;;  %v217_v11 = vsel %vm198_vm0, %v196_v0, 0.0  ;;  %s195_s7 = scalar_lea.vmem [#allocation7], %s729_s6  ;;  %s368_s28 = sshll.u32 %s599_s13, 7 }
  0x56   : > { %200 = vmax.xlane.f32.xlu0 %v199_v1  ;;  %211 = vadd.xlane.f32.xlu1 %v210_v3  ;;  %v230_v18 = vshrl.u32 %v229_v14, 7  ;;  %v231_v21 = vstv %s366_s20  ;;  %s262_s14 = sshll.u32 %s195_s7, 4  ;;  %s756_s17 = scalar_lea.hbm %s800_s2, %s368_s28  ;;  %s751_s14 = int_to_ptr.vmem [resolvable:$true] %s262_s14 }
  0x57   : > { %v214_v5 = vsel %vm198_vm0, %v213_v4, 0.0  ;;  %s249_s19 = scalar_lea.sflag [#allocation4], %s726_s5  ;;  %s488_s23 = scalar_lea.vmem %s751_s14, 128 }
  0x58   : > { %v232_v25 = vadd.s32 %v231_v21, %v230_v18  ;;  %p489_p13 = scmp.ne.s32.totalorder %s751_s14, %s488_s23  ;;  %p813_p3 = scmp.ne.s32.totalorder %s805_s21, 0 }
  0x59   : > { %s562_s13 = smov [#allocation7]  }
  0x5a   : > { %215 = vadd.xlane.f32.xlu1 %v214_v5  ;;  %vm233_vm1 = vcmp.lt.s32.totalorder %v232_v25, 16  ;;  %p490_p7 = pnand %p489_p13, %p813_p3  ;;  %s492_s25 = sshll.u32 %s562_s13, 4  ;;  %s493_s25 = int_to_ptr.vmem [resolvable:$false] %s492_s25 }
  0x5b   : > { %s494_s26 = scalar_lea.vmem %s493_s25, 256  ;;  %p495_p8 = scmp.lt.s32.totalorder %s751_s14, %s493_s25 }
  0x5c   : > { %p491_p5 = pneg %p490_p7  ;;  %p496_p9 = scmp.lt.s32.totalorder %s494_s26, %s488_s23 }
  0x5e   : > { %p497_p0 = por %p496_p9, %p495_p8 }
  0x60   : > { %p498_p1 = pnand %p497_p0, %p491_p5 }
  0xe3   : > { %v201_v6 = vpop.xlane.xlu0 %200  ;;  %v212_v13 = vpop.xlane.xlu1 %211 }
  0xe4   : > { %v202_v7 = vsub.f32 %v196_v0, %v201_v6  ;;  %v221_v15 = vmul.f32 0.9, %v212_v13 }
  0xe6   : > { %v203_v8 = vmul.f32 1.442695, %v202_v7  ;;  %v222_v20 = vadd.f32 0.1, %v221_v15 }
  0xe7   : > { %v216_v17 = vpop.xlane.xlu1 %215 }
  0xe8   : > { %424 = vpow2.f32 %v203_v8  ;;  %v224_v24 = vmul.f32 0.9, %v216_v17 }
  0xf2   : > { %v425_v9 = vpop.eup %424 }
  0xf3   : > { %v205_v10 = vsel %vm198_vm0, %v425_v9, 0.0 }
  0xf4   : > { %206 = vadd.xlane.f32.xlu0 %v205_v10 }
  0xf8   : > { %218 = vadd.xlane.f32.xlu0 %v217_v11 }
 0x181   : > { %v207_v12 = vpop.xlane.xlu0 %206 }
 0x182   : > { %426 = vlog2.f32 %v207_v12 }
 0x185   : > { %v219_v22 = vpop.xlane.xlu0 %218 }
 0x186   : > { %v226_v27 = vmul.f32 0.003125, %v219_v22 }
 0x18c   : > { %v427_v16 = vpop.eup %426 }
 0x18d   : > { %v209_v19 = vmul.f32 0.6931472, %v427_v16 }
 0x18f   : > { %v220_v23 = vadd.f32 %v209_v19, %v201_v6 }
 0x191   : > { %v223_v26 = vmul.f32 %v222_v20, %v220_v23 }
 0x193   : > { %v225_v28 = vsub.f32 %v223_v26, %v224_v24 }
 0x195   : > { %v227_v29 = vsub.f32 %v225_v28, %v226_v27 }
 0x197   : > { %v234_v30 = vsel %vm233_vm1, %v227_v29, 0.0 }
 0x198   : > { %v236_v31 = vsel %vm235_vm2, %v234_v30, 0.0 }
 0x199   : > { %237 = vadd.xlane.f32.xlu1 %v236_v31 }
 0x226   : > { %v238_v32 = vpop.xlane.xlu1 %237 }
 0x227   : > { %v239_v33 = vrot.slane %v238_v32, 4 }
 0x229   : > { %v240_v34 = vadd.f32 %v239_v33, %v238_v32 }
 0x22b   : > { %v241_v35 = vrot.slane %v240_v34, 2 }
 0x22d   : > { %v242_v36 = vadd.f32 %v241_v35, %v240_v34 }
 0x22f   : > { %v243_v37 = vrot.slane %v242_v36, 1 }
 0x231   : > { %v244_v38 = vadd.f32 %v243_v37, %v242_v36 }
 0x233   : > { %371 = vpush %v244_v38 }
 0x264   : > { %s372_s4 = spop %371 }
 0x265   : > { %v246_v39 = vstv %s372_s4 }
 0x266   : > { %247 = vst [vmem:[%s195_s7] sm:$0xff] %v246_v39 }
 0x267   : > { %501 = shalt.err (!%p498_p1)
}
 0x268   : > { %s502_s27 = scalar_lea.hbm %s756_s17, 128  ;;  %s506_s8 = scalar_lea.hbm %s800_s2, 256 }
 0x269   : > { %p503_p11 = scmp.ne.s32.totalorder %s756_s17, %s502_s27  ;;  %p507_p4 = scmp.lt.u32.totalorder %s756_s17, %s800_s2 }
 0x26a   : > { %p508_p10 = scmp.lt.u32.totalorder %s506_s8, %s502_s27  ;;  %p510_p13 = scmp.lt.u32.totalorder %s502_s27, %s756_s17 }
 0x26b   : > { %p504_p12 = pnand %p503_p11, %p813_p3 }
 0x26c   : > { %p509_p6 = por %p508_p10, %p507_p4 }
 0x26d   : > { %p505_p2 = pneg %p504_p12 }
 0x26e   : > { %p511_p7 = por %p510_p13, %p509_p6 }
 0x270   : > { %p512_p5 = pnand %p511_p7, %p505_p2 }
 0x272   : > { %515 = shalt.err (!%p512_p5)
}
 0x273   : > { %377 = dma.vmem_to_hbm [thread:$0]  (%p813_p3), %s751_s14, 128, %s756_s17, %s249_s19  }
 0x274 PF: > { %s274_s29 = sand.u32 1, %s546_s9   ;;  %p814_p8 = scmp.ne.s32.totalorder %s806_s22, 0 }
 0x275   : > { %p815_p9 = scmp.ge.s32.totalorder %s558_s12, 2  ;;  %s275_s20 = scalar_lea.sflag [#allocation4], %s274_s29 }
 0x277   : > { %p387_p0 = pnand %p815_p9, %p814_p8 }
 0x279   : > { %541 = dma.done.wait (!%p387_p0), %s275_s20, 128  }
 0x27a   : > { %543 = vsyncadd (!%p387_p0), %s275_s20, 4294967168  ;;  %p18_p1 = scmp.ge.s32.totalorder %s603_s15, 4   ;;  %s816_s9 = smov %s550_s10 }
 0x27b   : > { %s817_s10 = smov %s554_s11  ;;  %s818_s11 = smov %s615_s18 }
 0x27c   : > { %s819_s12 = smov %s603_s15  ;;  %20 = sbr.rel (!%p18_p1) target bundleno = 7 (0x7), region = 86 }
 0x283   :  { %280 = vsyncpa [#allocation3], 1 }
 0x284   :  { %282 = vsyncpa [#allocation3 + $0x1], 1 }
 0x285   :  { %283 = vsyncpa [#allocation6], 1 }
 0x286   :  { %285 = vsyncpa [#allocation6 + $0x1], 1 }
 0x287   :  { %286 = vsyncpa [#allocation4], 1 }
 0x288   :  { %288 = vsyncpa [#allocation4 + $0x1], 1 }

</bundles_post_ra>
